<compile_context>
chip_gen: v7x
topology: tpu7x:2x2x1
jax: 0.10.0
libtpu: 0.0.40
codegen_flags: <defaults>
</compile_context>

<pallas_src>
import functools

import jax
import jax.numpy as jnp
from jax.experimental import pallas as pl
from jax.experimental.pallas import tpu as pltpu


def _spearman_loss_kernel(x1_ref, x2_ref, lab_ref, out_ref,
                          d11_ref, d22_ref, d12_ref, *, inv_temp):
    k = pl.program_id(0)

    # --- init lane-dense accumulators on first D-tile ---
    @pl.when(k == 0)
    def _():
        d11_ref[...] = jnp.zeros_like(d11_ref)
        d22_ref[...] = jnp.zeros_like(d22_ref)
        d12_ref[...] = jnp.zeros_like(d12_ref)

    # --- streaming phase: lane-dense partial reductions over this D tile ---
    blk_b, blk_d = x1_ref.shape
    n_chunks = blk_d // 128                      # static (tile_d is a mult. of 128)

    a11 = jnp.zeros((blk_b, 128), jnp.float32)
    a22 = jnp.zeros((blk_b, 128), jnp.float32)
    a12 = jnp.zeros((blk_b, 128), jnp.float32)
    for t in range(n_chunks):                    # static unroll (<= 32 chunks)
        sl = pl.ds(t * 128, 128)
        x1 = x1_ref[:, sl].astype(jnp.float32)   # (B, 128) — only one chunk live
        x2 = x2_ref[:, sl].astype(jnp.float32)
        a11 = a11 + x1 * x1
        a22 = a22 + x2 * x2
        a12 = a12 + x1 * x2

    # single full-lane unmasked RMW per accumulator per grid step
    d11_ref[...] += a11
    d22_ref[...] += a22
    d12_ref[...] += a12

    # --- finalize on last D-tile: cosine, softmax over batch, Pearson corr ---
    @pl.when(k == pl.num_programs(0) - 1)
    def _():
        # one 128 -> 1 cross-lane reduce per accumulator (XLU), done once
        d11 = jnp.sum(d11_ref[...], axis=1, keepdims=True)     # (B, 1)
        d22 = jnp.sum(d22_ref[...], axis=1, keepdims=True)
        d12 = jnp.sum(d12_ref[...], axis=1, keepdims=True)

        eps_norm = 1e-12                          # F.normalize default eps
        n1 = jnp.maximum(jnp.sqrt(d11), eps_norm)
        n2 = jnp.maximum(jnp.sqrt(d22), eps_norm)
        sim = d12 * pl.reciprocal(n1 * n2, approx=False)        # (B, 1)

        # softmax over the batch dim (dim=0), numerically stable
        s = sim * inv_temp
        s_max = jnp.max(s, axis=0, keepdims=True)                # (1, 1)
        e = jnp.exp(s - s_max)
        denom_sm = jnp.sum(e, axis=0, keepdims=True)
        sm = e * pl.reciprocal(denom_sm, approx=False)           # (B, 1)

        lab = lab_ref[...].astype(jnp.float32)                   # (B, 1)
        b = sm.shape[0]
        sm_c = sm - jnp.sum(sm, axis=(0, 1), keepdims=True) / b
        lab_c = lab - jnp.sum(lab, axis=(0, 1), keepdims=True) / b

        t_m1 = jnp.sqrt(jnp.sum(sm_c * sm_c, axis=(0, 1), keepdims=True))
        t_m2 = jnp.sqrt(jnp.sum(lab_c * lab_c, axis=(0, 1), keepdims=True))
        num = jnp.sum(sm_c * lab_c, axis=(0, 1), keepdims=True)

        inv_denom = pl.reciprocal(jnp.maximum(t_m1 * t_m2, 1e-8), approx=False)
        corr = num * inv_denom                                    # (1, 1)
        out_ref[...] = (-corr).astype(jnp.float32)


def _round_up(x, m):
    return ((x + m - 1) // m) * m


def _vmem_capacity_bytes():
    """Trace-time query of physical VMEM; conservative fallback if unavailable."""
    try:
        return int(pltpu.get_tpu_info().vmem_capacity_bytes)
    except Exception:
        return 64 * 1024 * 1024


def _pick_tile_d(B, D, itemsize, stream_budget):
    """Largest 128-multiple D tile that keeps 2 inputs x 2 pipeline buffers under budget."""
    max_by_vmem = stream_budget // (4 * max(B, 1) * max(itemsize, 1))
    max_by_vmem = max(128, (max_by_vmem // 128) * 128)
    d_pad128 = _round_up(max(D, 1), 128)
    # cap at 4096 lanes (32 unrolled 128-wide chunks): >=512-wide tiles already
    # hit ~85%+ of the HBM roofline, bigger tiles only grow the unroll.
    return int(min(d_pad128, max_by_vmem, 4096))


def spearman_correlation_loss(input1, input2, label, temp=0.2, tile_d=None):
    """input1, input2: (B, D) (any float dtype); label: (B,). Returns scalar f32 loss."""
    B, D = input1.shape
    assert input2.shape == (B, D)
    itemsize = jnp.dtype(input1.dtype).itemsize

    # Generation-aware budgets: v5e/v6e have 128 MiB physical VMEM, v7x has 64 MiB.
    vmem_cap = _vmem_capacity_bytes()
    if vmem_cap >= 96 * 1024 * 1024:          # v5e / v6e
        stream_budget = 32 * 1024 * 1024
        vmem_limit = 64 * 1024 * 1024
    else:                                      # v7x / unknown (conservative)
        stream_budget = 16 * 1024 * 1024
        vmem_limit = 40 * 1024 * 1024

    if tile_d is None:
        tile_d = _pick_tile_d(B, D, itemsize, stream_budget)
    assert tile_d % 128 == 0, "tile_d must be a multiple of 128"

    # Zero-pad D up to a multiple of tile_d (exact: zeros add nothing to d11/d22/d12).
    d_pad = _round_up(D, tile_d)
    if d_pad != D:
        pad = ((0, 0), (0, d_pad - D))
        input1 = jnp.pad(input1, pad)
        input2 = jnp.pad(input2, pad)
    n_k = d_pad // tile_d

    lab2d = jnp.asarray(label, dtype=jnp.float32).reshape(B, 1)

    kernel = functools.partial(_spearman_loss_kernel, inv_temp=float(1.0 / temp))

    out = pl.pallas_call(
        kernel,
        out_shape=jax.ShapeDtypeStruct((1, 1), jnp.float32),
        grid_spec=pltpu.PrefetchScalarGridSpec(
            num_scalar_prefetch=0,
            grid=(n_k,),
            in_specs=[
                pl.BlockSpec((B, tile_d), lambda k: (0, k)),
                pl.BlockSpec((B, tile_d), lambda k: (0, k)),
                pl.BlockSpec((B, 1), lambda k: (0, 0)),
            ],
            out_specs=pl.BlockSpec((1, 1), lambda k: (0, 0)),
            scratch_shapes=[
                pltpu.VMEM((B, 128), jnp.float32),   # d11 (lane-dense)
                pltpu.VMEM((B, 128), jnp.float32),   # d22
                pltpu.VMEM((B, 128), jnp.float32),   # d12
            ],
        ),
        compiler_params=pltpu.CompilerParams(
            dimension_semantics=("arbitrary",),       # D is a reduction axis
            vmem_limit_bytes=vmem_limit,
        ),
    )(input1, input2, lab2d)
    return out[0, 0]


def _reference(input1, input2, label, temp=0.2):
    # pure-JAX reference for sanity checking
    def normalize(x):
        x = x.astype(jnp.float32)
        n = jnp.sqrt(jnp.sum(x * x, axis=1, keepdims=True))
        return x / jnp.maximum(n, 1e-12)

    sim = jnp.sum(normalize(input1) * normalize(input2), axis=1)
    sm = jax.nn.softmax(sim / temp, axis=0)
    sm_c = sm - jnp.mean(sm)
    lab_c = label.astype(jnp.float32) - jnp.mean(label.astype(jnp.float32))
    t1 = jnp.sqrt(jnp.sum(sm_c ** 2))
    t2 = jnp.sqrt(jnp.sum(lab_c ** 2))
    corr = jnp.sum(sm_c * lab_c) / jnp.clip(t1 * t2, 1e-8, jnp.inf)
    return -corr


if __name__ == "__main__":
    key = jax.random.PRNGKey(0)
    k1, k2, k3, k4, k5, k6, k7, k8, k9 = jax.random.split(key, 9)

    # Case 1: tiny ragged D (exercises zero-padding 32 -> 128), single grid step.
    B, D = 8, 32
    input1 = jax.random.normal(k1, (B, D), dtype=jnp.float32)
    input2 = jax.random.normal(k2, (B, D), dtype=jnp.float32)
    label = jax.random.uniform(k3, (B,), dtype=jnp.float32)

    loss = spearman_correlation_loss(input1, input2, label, temp=0.2)
    jax.block_until_ready(loss)
    ref = _reference(input1, input2, label, temp=0.2)
    assert jnp.allclose(loss, ref, atol=1e-5, rtol=1e-5), (loss, ref)

    # Case 2: multi-step D grid + multi-chunk lane-dense accumulation
    # (D=512, tile_d=256 -> 2 grid steps, 2 chunks of 128 per step).
    B2, D2 = 8, 512
    a1 = jax.random.normal(k4, (B2, D2), dtype=jnp.float32)
    a2 = jax.random.normal(k5, (B2, D2), dtype=jnp.float32)
    lab2 = jax.random.uniform(k6, (B2,), dtype=jnp.float32)

    loss2 = spearman_correlation_loss(a1, a2, lab2, temp=0.2, tile_d=256)
    jax.block_until_ready(loss2)
    ref2 = _reference(a1, a2, lab2, temp=0.2)
    assert jnp.allclose(loss2, ref2, atol=1e-5, rtol=1e-5), (loss2, ref2)

    # Case 3: bf16 inputs with ragged D (pads 200 -> 256), exercises the
    # per-chunk in-kernel f32 upcast path.
    B3, D3 = 8, 200
    b1 = jax.random.normal(k7, (B3, D3), dtype=jnp.bfloat16)
    b2 = jax.random.normal(k8, (B3, D3), dtype=jnp.bfloat16)
    lab3 = jax.random.uniform(k9, (B3,), dtype=jnp.float32)

    loss3 = spearman_correlation_loss(b1, b2, lab3, temp=0.2)
    jax.block_until_ready(loss3)
    ref3 = _reference(b1, b2, lab3, temp=0.2)
    assert jnp.allclose(loss3, ref3, atol=1e-4, rtol=1e-4), (loss3, ref3)

    print("KERNEL_OK")
</pallas_src>

<mosaic_0001>
module attributes {stable_mosaic.version = 11 : i64} {
  func.func @_spearman_loss_kernel(%arg0: i32, %arg1: memref<8x128xf32, #tpu.memory_space<vmem>>, %arg2: memref<8x128xf32, #tpu.memory_space<vmem>>, %arg3: memref<8x1xf32, #tpu.memory_space<vmem>>, %arg4: memref<1x1xf32, #tpu.memory_space<vmem>>, %arg5: memref<8x128xf32, #tpu.memory_space<vmem>>, %arg6: memref<8x128xf32, #tpu.memory_space<vmem>>, %arg7: memref<8x128xf32, #tpu.memory_space<vmem>>) attributes {dimension_semantics = [#tpu.dimension_semantics<arbitrary>], iteration_bounds = array<i64: 1>, scalar_prefetch = 0 : i64, scratch_operands = 3 : i64, tpu.core_type = #tpu.core_type<tc>, window_params = [{transform_indices = @transform_0, window_bounds = array<i64: 8, 128>}, {transform_indices = @transform_1, window_bounds = array<i64: 8, 128>}, {pipeline_mode = #tpu.pipeline_mode<synchronous>, transform_indices = @transform_2, window_bounds = array<i64: 8, 1>}, {pipeline_mode = #tpu.pipeline_mode<synchronous>, transform_indices = @transform_3, window_bounds = array<i64: 1, 1>}]} {
    %c0_i32 = arith.constant 0 : i32
    %0 = arith.cmpi eq, %arg0, %c0_i32 : i32
    %1 = arith.extui %0 : i1 to i32
    %c0_i32_0 = arith.constant 0 : i32
    %2 = arith.cmpi ne, %1, %c0_i32_0 : i32
    scf.if %2 {
      %cst_20 = arith.constant 0.000000e+00 : f32
      %26 = vector.broadcast %cst_20 : f32 to vector<8x128xf32>
      %c0_21 = arith.constant 0 : index
      %c0_22 = arith.constant 0 : index
      %27 = vector.load %arg5[%c0_21, %c0_22] : memref<8x128xf32, #tpu.memory_space<vmem>>, vector<8x128xf32>
      tpu.vector_store %arg5[%c0_21, %c0_22], %26 {strides = array<i32>} : memref<8x128xf32, #tpu.memory_space<vmem>>, vector<8x128xf32>,
      %cst_23 = arith.constant 0.000000e+00 : f32
      %28 = vector.broadcast %cst_23 : f32 to vector<8x128xf32>
      %c0_24 = arith.constant 0 : index
      %c0_25 = arith.constant 0 : index
      %29 = vector.load %arg6[%c0_24, %c0_25] : memref<8x128xf32, #tpu.memory_space<vmem>>, vector<8x128xf32>
      tpu.vector_store %arg6[%c0_24, %c0_25], %28 {strides = array<i32>} : memref<8x128xf32, #tpu.memory_space<vmem>>, vector<8x128xf32>,
      %cst_26 = arith.constant 0.000000e+00 : f32
      %30 = vector.broadcast %cst_26 : f32 to vector<8x128xf32>
      %c0_27 = arith.constant 0 : index
      %c0_28 = arith.constant 0 : index
      %31 = vector.load %arg7[%c0_27, %c0_28] : memref<8x128xf32, #tpu.memory_space<vmem>>, vector<8x128xf32>
      tpu.vector_store %arg7[%c0_27, %c0_28], %30 {strides = array<i32>} : memref<8x128xf32, #tpu.memory_space<vmem>>, vector<8x128xf32>,
    } else {
    }
    %cst = arith.constant 0.000000e+00 : f32
    %3 = vector.broadcast %cst : f32 to vector<8x128xf32>
    %cst_1 = arith.constant 0.000000e+00 : f32
    %4 = vector.broadcast %cst_1 : f32 to vector<8x128xf32>
    %cst_2 = arith.constant 0.000000e+00 : f32
    %5 = vector.broadcast %cst_2 : f32 to vector<8x128xf32>
    %c0 = arith.constant 0 : index
    %c0_3 = arith.constant 0 : index
    %6 = vector.load %arg1[%c0, %c0_3] : memref<8x128xf32, #tpu.memory_space<vmem>>, vector<8x128xf32>
    %c0_4 = arith.constant 0 : index
    %c0_5 = arith.constant 0 : index
    %7 = vector.load %arg2[%c0_4, %c0_5] : memref<8x128xf32, #tpu.memory_space<vmem>>, vector<8x128xf32>
    %8 = arith.mulf %6, %6 : vector<8x128xf32>
    %9 = arith.addf %3, %8 : vector<8x128xf32>
    %10 = arith.mulf %7, %7 : vector<8x128xf32>
    %11 = arith.addf %4, %10 : vector<8x128xf32>
    %12 = arith.mulf %6, %7 : vector<8x128xf32>
    %13 = arith.addf %5, %12 : vector<8x128xf32>
    %c0_6 = arith.constant 0 : index
    %c0_7 = arith.constant 0 : index
    %14 = vector.load %arg5[%c0_6, %c0_7] : memref<8x128xf32, #tpu.memory_space<vmem>>, vector<8x128xf32>
    %15 = arith.addf %14, %9 : vector<8x128xf32>
    %c0_8 = arith.constant 0 : index
    %c0_9 = arith.constant 0 : index
    %16 = vector.load %arg5[%c0_8, %c0_9] : memref<8x128xf32, #tpu.memory_space<vmem>>, vector<8x128xf32>
    tpu.vector_store %arg5[%c0_8, %c0_9], %15 {strides = array<i32>} : memref<8x128xf32, #tpu.memory_space<vmem>>, vector<8x128xf32>,
    %c0_10 = arith.constant 0 : index
    %c0_11 = arith.constant 0 : index
    %17 = vector.load %arg6[%c0_10, %c0_11] : memref<8x128xf32, #tpu.memory_space<vmem>>, vector<8x128xf32>
    %18 = arith.addf %17, %11 : vector<8x128xf32>
    %c0_12 = arith.constant 0 : index
    %c0_13 = arith.constant 0 : index
    %19 = vector.load %arg6[%c0_12, %c0_13] : memref<8x128xf32, #tpu.memory_space<vmem>>, vector<8x128xf32>
    tpu.vector_store %arg6[%c0_12, %c0_13], %18 {strides = array<i32>} : memref<8x128xf32, #tpu.memory_space<vmem>>, vector<8x128xf32>,
    %c0_14 = arith.constant 0 : index
    %c0_15 = arith.constant 0 : index
    %20 = vector.load %arg7[%c0_14, %c0_15] : memref<8x128xf32, #tpu.memory_space<vmem>>, vector<8x128xf32>
    %21 = arith.addf %20, %13 : vector<8x128xf32>
    %c0_16 = arith.constant 0 : index
    %c0_17 = arith.constant 0 : index
    %22 = vector.load %arg7[%c0_16, %c0_17] : memref<8x128xf32, #tpu.memory_space<vmem>>, vector<8x128xf32>
    tpu.vector_store %arg7[%c0_16, %c0_17], %21 {strides = array<i32>} : memref<8x128xf32, #tpu.memory_space<vmem>>, vector<8x128xf32>,
    %c0_i32_18 = arith.constant 0 : i32
    %23 = arith.cmpi eq, %arg0, %c0_i32_18 : i32
    %24 = arith.extui %23 : i1 to i32
    %c0_i32_19 = arith.constant 0 : i32
    %25 = arith.cmpi ne, %24, %c0_i32_19 : i32
    scf.if %25 {
      %c0_20 = arith.constant 0 : index
      %c0_21 = arith.constant 0 : index
      %26 = vector.load %arg5[%c0_20, %c0_21] : memref<8x128xf32, #tpu.memory_space<vmem>>, vector<8x128xf32>
      %cst_22 = arith.constant dense<0.000000e+00> : vector<8xf32>
      %27 = vector.multi_reduction <add>, %26, %cst_22 [1] : vector<8x128xf32> to vector<8xf32>
      %28 = vector.shape_cast %27 : vector<8xf32> to vector<8x1xf32>
      %c0_23 = arith.constant 0 : index
      %c0_24 = arith.constant 0 : index
      %29 = vector.load %arg6[%c0_23, %c0_24] : memref<8x128xf32, #tpu.memory_space<vmem>>, vector<8x128xf32>
      %cst_25 = arith.constant dense<0.000000e+00> : vector<8xf32>
      %30 = vector.multi_reduction <add>, %29, %cst_25 [1] : vector<8x128xf32> to vector<8xf32>
      %31 = vector.shape_cast %30 : vector<8xf32> to vector<8x1xf32>
      %c0_26 = arith.constant 0 : index
      %c0_27 = arith.constant 0 : index
      %32 = vector.load %arg7[%c0_26, %c0_27] : memref<8x128xf32, #tpu.memory_space<vmem>>, vector<8x128xf32>
      %cst_28 = arith.constant dense<0.000000e+00> : vector<8xf32>
      %33 = vector.multi_reduction <add>, %32, %cst_28 [1] : vector<8x128xf32> to vector<8xf32>
      %34 = vector.shape_cast %33 : vector<8xf32> to vector<8x1xf32>
      %35 = math.sqrt %28 : vector<8x1xf32>
      %cst_29 = arith.constant 9.99999996E-13 : f32
      %36 = vector.broadcast %cst_29 : f32 to vector<8x1xf32>
      %37 = arith.maximumf %35, %36 : vector<8x1xf32>
      %38 = math.sqrt %31 : vector<8x1xf32>
      %cst_30 = arith.constant 9.99999996E-13 : f32
      %39 = vector.broadcast %cst_30 : f32 to vector<8x1xf32>
      %40 = arith.maximumf %38, %39 : vector<8x1xf32>
      %41 = arith.mulf %37, %40 : vector<8x1xf32>
      %42 = tpu.reciprocal %41 : vector<8x1xf32> -> vector<8x1xf32>
      %43 = arith.mulf %34, %42 : vector<8x1xf32>
      %cst_31 = arith.constant 5.000000e+00 : f32
      %44 = vector.broadcast %cst_31 : f32 to vector<8x1xf32>
      %45 = arith.mulf %43, %44 : vector<8x1xf32>
      %cst_32 = arith.constant dense<0xFF800000> : vector<1xf32>
      %46 = vector.multi_reduction <maximumf>, %45, %cst_32 [0] : vector<8x1xf32> to vector<1xf32>
      %47 = vector.shape_cast %46 : vector<1xf32> to vector<1x1xf32>
      %48 = vector.broadcast %47 : vector<1x1xf32> to vector<8x1xf32>
      %49 = arith.subf %45, %48 : vector<8x1xf32>
      %50 = math.exp %49 : vector<8x1xf32>
      %cst_33 = arith.constant dense<0.000000e+00> : vector<1xf32>
      %51 = vector.multi_reduction <add>, %50, %cst_33 [0] : vector<8x1xf32> to vector<1xf32>
      %52 = vector.shape_cast %51 : vector<1xf32> to vector<1x1xf32>
      %53 = tpu.reciprocal %52 : vector<1x1xf32> -> vector<1x1xf32>
      %54 = vector.broadcast %53 : vector<1x1xf32> to vector<8x1xf32>
      %55 = arith.mulf %50, %54 : vector<8x1xf32>
      %c0_34 = arith.constant 0 : index
      %c0_35 = arith.constant 0 : index
      %56 = vector.load %arg3[%c0_34, %c0_35] : memref<8x1xf32, #tpu.memory_space<vmem>>, vector<8x1xf32>
      %57 = vector.shape_cast %55 : vector<8x1xf32> to vector<1x8x1xf32>
      %cst_36 = arith.constant dense<0.000000e+00> : vector<1xf32>
      %58 = vector.multi_reduction <add>, %57, %cst_36 [1, 2] : vector<1x8x1xf32> to vector<1xf32>
      %59 = vector.shape_cast %58 : vector<1xf32> to vector<1x1x1xf32>
      %60 = vector.extract %59[0, 0, 0] : f32 from vector<1x1x1xf32>
      %61 = vector.broadcast %60 : f32 to vector<1x1xf32>
      %cst_37 = arith.constant 8.000000e+00 : f32
      %62 = vector.broadcast %cst_37 : f32 to vector<1x1xf32>
      %63 = arith.divf %61, %62 : vector<1x1xf32>
      %64 = vector.broadcast %63 : vector<1x1xf32> to vector<8x1xf32>
      %65 = arith.subf %55, %64 : vector<8x1xf32>
      %66 = vector.shape_cast %56 : vector<8x1xf32> to vector<1x8x1xf32>
      %cst_38 = arith.constant dense<0.000000e+00> : vector<1xf32>
      %67 = vector.multi_reduction <add>, %66, %cst_38 [1, 2] : vector<1x8x1xf32> to vector<1xf32>
      %68 = vector.shape_cast %67 : vector<1xf32> to vector<1x1x1xf32>
      %69 = vector.extract %68[0, 0, 0] : f32 from vector<1x1x1xf32>
      %70 = vector.broadcast %69 : f32 to vector<1x1xf32>
      %cst_39 = arith.constant 8.000000e+00 : f32
      %71 = vector.broadcast %cst_39 : f32 to vector<1x1xf32>
      %72 = arith.divf %70, %71 : vector<1x1xf32>
      %73 = vector.broadcast %72 : vector<1x1xf32> to vector<8x1xf32>
      %74 = arith.subf %56, %73 : vector<8x1xf32>
      %75 = arith.mulf %65, %65 : vector<8x1xf32>
      %76 = vector.shape_cast %75 : vector<8x1xf32> to vector<1x8x1xf32>
      %cst_40 = arith.constant dense<0.000000e+00> : vector<1xf32>
      %77 = vector.multi_reduction <add>, %76, %cst_40 [1, 2] : vector<1x8x1xf32> to vector<1xf32>
      %78 = vector.shape_cast %77 : vector<1xf32> to vector<1x1x1xf32>
      %79 = vector.extract %78[0, 0, 0] : f32 from vector<1x1x1xf32>
      %80 = vector.broadcast %79 : f32 to vector<1x1xf32>
      %81 = math.sqrt %80 : vector<1x1xf32>
      %82 = arith.mulf %74, %74 : vector<8x1xf32>
      %83 = vector.shape_cast %82 : vector<8x1xf32> to vector<1x8x1xf32>
      %cst_41 = arith.constant dense<0.000000e+00> : vector<1xf32>
      %84 = vector.multi_reduction <add>, %83, %cst_41 [1, 2] : vector<1x8x1xf32> to vector<1xf32>
      %85 = vector.shape_cast %84 : vector<1xf32> to vector<1x1x1xf32>
      %86 = vector.extract %85[0, 0, 0] : f32 from vector<1x1x1xf32>
      %87 = vector.broadcast %86 : f32 to vector<1x1xf32>
      %88 = math.sqrt %87 : vector<1x1xf32>
      %89 = arith.mulf %65, %74 : vector<8x1xf32>
      %90 = vector.shape_cast %89 : vector<8x1xf32> to vector<1x8x1xf32>
      %cst_42 = arith.constant dense<0.000000e+00> : vector<1xf32>
      %91 = vector.multi_reduction <add>, %90, %cst_42 [1, 2] : vector<1x8x1xf32> to vector<1xf32>
      %92 = vector.shape_cast %91 : vector<1xf32> to vector<1x1x1xf32>
      %93 = vector.extract %92[0, 0, 0] : f32 from vector<1x1x1xf32>
      %94 = vector.broadcast %93 : f32 to vector<1x1xf32>
      %95 = arith.mulf %81, %88 : vector<1x1xf32>
      %cst_43 = arith.constant 9.99999993E-9 : f32
      %96 = vector.broadcast %cst_43 : f32 to vector<1x1xf32>
      %97 = arith.maximumf %95, %96 : vector<1x1xf32>
      %98 = tpu.reciprocal %97 : vector<1x1xf32> -> vector<1x1xf32>
      %99 = arith.mulf %94, %98 : vector<1x1xf32>
      %cst_44 = arith.constant 0.000000e+00 : f32
      %100 = vector.broadcast %cst_44 : f32 to vector<1x1xf32>
      %101 = arith.subf %100, %99 : vector<1x1xf32>
      %c0_45 = arith.constant 0 : index
      %c0_46 = arith.constant 0 : index
      %102 = vector.load %arg4[%c0_45, %c0_46] : memref<1x1xf32, #tpu.memory_space<vmem>>, vector<1x1xf32>
      tpu.vector_store %arg4[%c0_45, %c0_46], %101 {strides = array<i32>} : memref<1x1xf32, #tpu.memory_space<vmem>>, vector<1x1xf32>,
    } else {
    }
    return
  }
  func.func @transform_0(%arg0: i32) -> (i32, i32) {
    %c0_i32 = arith.constant 0 : i32
    %c0_i32_0 = arith.constant 0 : i32
    return %c0_i32, %arg0 : i32, i32
  }
  func.func @transform_1(%arg0: i32) -> (i32, i32) {
    %c0_i32 = arith.constant 0 : i32
    %c0_i32_0 = arith.constant 0 : i32
    return %c0_i32, %arg0 : i32, i32
  }
  func.func @transform_2(%arg0: i32) -> (i32, i32) {
    %c0_i32 = arith.constant 0 : i32
    %c0_i32_0 = arith.constant 0 : i32
    %c0_i32_1 = arith.constant 0 : i32
    return %c0_i32, %c0_i32_0 : i32, i32
  }
  func.func @transform_3(%arg0: i32) -> (i32, i32) {
    %c0_i32 = arith.constant 0 : i32
    %c0_i32_0 = arith.constant 0 : i32
    %c0_i32_1 = arith.constant 0 : i32
    return %c0_i32, %c0_i32_0 : i32, i32
  }
}

</mosaic_0001>

<bundles_post_ra>
// kernel: tpu_custom_call.1
= control target key start
LH: loop header
LB: loop body
LE: loop exit
PB: predicated region body
PF: predicated region fallthrough
CT: control target
= control target key end

     0   :  { %8 = vsyncpa [#allocation6], 0  ;;  %s338_s0 = inlined_call_operand.vmem [shape: f32[8,128], index: 0, kind: input, shape index: {}]   ;;  %s339_s1 = inlined_call_operand.hbm [shape: f32[8,128], index: 1, kind: input, shape index: {}]   ;;  %s340_s2 = inlined_call_operand.vmem [shape: f32[8,1], index: 2, kind: input, shape index: {}]   ;;  %s341_s3 = inlined_call_operand.hbm [shape: f32[1,1], index: 3, kind: output, shape index: {}]  }
   0x1   :  { %9 = vsyncpa [#allocation7], 0  ;;  %s277_s12 = smov [#allocation5]   ;;  %s229_s16 = scalar_lea.hbm %s339_s1, 128 }
   0x2   :  { %s18_s13 = sshll.u32 %s277_s12, 4  ;;  %p230_p0 = scmp.ne.s32.totalorder %s339_s1, %s229_s16  ;;  %s19_s13 = int_to_ptr.vmem [resolvable:$true] %s18_s13 }
   0x3   :  { %p233_p1 = scmp.lt.u32.totalorder %s229_s16, %s339_s1 }
   0x5   :  { %p235_p2 = pnand %p233_p1, %p230_p0 }
   0x7   :  { %238 = shalt.err (!%p235_p2)
}
   0x8   :  { %s239_s21 = scalar_lea.vmem %s19_s13, 128  ;;  %p244_p4 = scmp.lt.s32.totalorder %s19_s13, %s19_s13 }
   0x9   :  { %p240_p3 = scmp.ne.s32.totalorder %s19_s13, %s239_s21  ;;  %p245_p5 = scmp.lt.s32.totalorder %s239_s21, %s239_s21 }
   0xb   :  { %p246_p6 = por %p245_p5, %p244_p4 }
   0xd   :  { %p247_p7 = pnand %p246_p6, %p240_p3 }
   0xf   :  { %250 = shalt.err (!%p247_p7)
}
  0x10   :  { %21 = dma.hbm_to_vmem [thread:$0]  %s339_s1, 128, %s19_s13, [#allocation6]  }
  0x11   :  { %273 = dma.done.wait [#allocation6], 128  }
  0x12   :  { %274 = vsyncadd [#allocation6], 4294967168  ;;  %v34_v0 = vld [vmem:[%s338_s0] sm:$0xff]  ;;  %vm101_vm0 = vcmask 7168   ;;  %s278_s30 = smov [#allocation8]   ;;  %vm184_vm9 = vcmask 0  }
  0x13   :  { %v35_v1 = vld [vmem:[#allocation5] sm:$0xff]  ;;  %v36_v2 = vmul.f32 %v34_v0, %v34_v0  ;;  %s192_s4 = sshll.u32 %s278_s30, 4  ;;  %s193_s4 = int_to_ptr.vmem [resolvable:$true] %s192_s4 }
  0x14   :  { %v40_v3 = vmul.f32 %v35_v1, %v34_v0  ;;  %v38_v4 = vmul.f32 %v35_v1, %v35_v1  ;;  %v317_v5 = vld [vmem:[%s340_s2] sm:$0xff]  ;;  %s251_s5 = scalar_lea.vmem %s193_s4, 16  ;;  %s255_s6 = scalar_lea.vmem %s193_s4, 32 }
  0x15   :  { %55 = vadd.xlane.f32.xlu0 %v36_v2  ;;  %v116_v6 = vsel %vm101_vm0, %v317_v5, 0.0  ;;  %p252_p8 = scmp.ne.s32.totalorder %s193_s4, %s251_s5  ;;  %p256_p9 = scmp.lt.s32.totalorder %s193_s4, %s193_s4 }
  0x16   :  { %61 = vadd.xlane.f32.xlu1 %v40_v3  ;;  %p257_p10 = scmp.lt.s32.totalorder %s255_s6, %s251_s5 }
  0x18   :  { %p258_p11 = por %p257_p10, %p256_p9 }
  0x19   :  { %58 = vadd.xlane.f32.xlu0 %v38_v4 }
  0x1a   :  { %p259_p12 = pnand %p258_p11, %p252_p8 }
  0x1d   :  { %117 = vadd.xlane.f32.xlu0 %v116_v6 }
  0xa2   :  { %v56_v7 = vpop.xlane.xlu0 %55 }
  0xa3   :  { %213 = vrsqrt.f32 %v56_v7  ;;  %vm65_vm1 = vcmp.eq.f32.partialorder %v56_v7, inf  ;;  %v68_v13 = vand.u32 2147483648, %v56_v7  ;;  %vm67_vm2 = vcmp.eq.f32.partialorder %v56_v7, 0.0  ;;  %v62_v22 = vpop.xlane.xlu1 %61 }
  0xa6   :  { %v59_v8 = vpop.xlane.xlu0 %58 }
  0xa7   :  { %215 = vrsqrt.f32 %v59_v8  ;;  %vm73_vm3 = vcmp.eq.f32.partialorder %v59_v8, inf  ;;  %v76_v16 = vand.u32 2147483648, %v59_v8  ;;  %vm75_vm4 = vcmp.eq.f32.partialorder %v59_v8, 0.0 }
  0xaa   :  { %v118_v44 = vpop.xlane.xlu0 %117 }
  0xab   :  { %v119_v45 = vrot.slane %v118_v44, 4 }
  0xad   :  { %v214_v9 = vpop.eup %213  ;;  %v120_v46 = vadd.f32 %v119_v45, %v118_v44 }
  0xae   :  { %v64_v10 = vmul.f32 %v214_v9, %v56_v7 }
  0xaf   :  { %v121_v47 = vrot.slane %v120_v46, 2 }
  0xb0   :  { %v66_v11 = vsel %vm65_vm1, %v56_v7, %v64_v10 }
  0xb1   :  { %v216_v12 = vpop.eup %215  ;;  %v69_v15 = vsel %vm67_vm2, %v68_v13, %v66_v11  ;;  %v122_v51 = vadd.f32 %v121_v47, %v120_v46 }
  0xb2   :  { %v72_v14 = vmul.f32 %v216_v12, %v59_v8  ;;  %v70_v19 = vmax.f32 %v69_v15, 1e-12 }
  0xb3   :  { %v123_v54 = vrot.slane %v122_v51, 1 }
  0xb4   :  { %v74_v17 = vsel %vm73_vm3, %v59_v8, %v72_v14 }
  0xb5   :  { %v77_v18 = vsel %vm75_vm4, %v76_v16, %v74_v17  ;;  %v124_v57 = vadd.f32 %v123_v54, %v122_v51 }
  0xb6   :  { %v78_v20 = vmax.f32 %v77_v18, 1e-12 }
  0xb8   :  { %v79_v21 = vmul.f32 %v78_v20, %v70_v19 }
  0xba   :  { %217 = vrcp.f32 %v79_v21 }
  0xc4   :  { %v218_v23 = vpop.eup %217 }
  0xc5   :  { %v81_v24 = vmul.f32 %v218_v23, %v62_v22 }
  0xc7   :  { %v82_v25 = vmul.f32 5.0, %v81_v24 }
  0xc9   :  { %v83_v26 = vrot.slane %v82_v25, 4 }
  0xcb   :  { %v84_v27 = vmax.f32 %v82_v25, %v83_v26 }
  0xcd   :  { %v85_v28 = vrot.slane %v84_v27, 2 }
  0xcf   :  { %v86_v29 = vmax.f32 %v84_v27, %v85_v28 }
  0xd1   :  { %v87_v30 = vrot.slane %v86_v29, 1 }
  0xd3   :  { %v88_v31 = vmax.f32 %v86_v29, %v87_v30 }
  0xd5   :  { %v89_v32 = vsub.f32 %v82_v25, %v88_v31 }
  0xd7   :  { %v90_v33 = vmul.f32 1.442695, %v89_v32 }
  0xd9   :  { %219 = vpow2.f32 %v90_v33 }
  0xe3   :  { %v220_v34 = vpop.eup %219 }
  0xe4   :  { %v92_v35 = vrot.slane %v220_v34, 4 }
  0xe6   :  { %v93_v36 = vadd.f32 %v220_v34, %v92_v35 }
  0xe8   :  { %v94_v37 = vrot.slane %v93_v36, 2 }
  0xea   :  { %v95_v38 = vadd.f32 %v94_v37, %v93_v36 }
  0xec   :  { %v96_v39 = vrot.slane %v95_v38, 1 }
  0xee   :  { %v97_v40 = vadd.f32 %v96_v39, %v95_v38 }
  0xf0   :  { %221 = vrcp.f32 %v97_v40 }
  0xfa   :  { %v222_v41 = vpop.eup %221 }
  0xfb   :  { %v99_v42 = vmul.f32 %v222_v41, %v220_v34 }
  0xfd   :  { %v102_v43 = vsel %vm101_vm0, %v99_v42, 0.0 }
  0xfe   :  { %103 = vadd.xlane.f32.xlu1 %v102_v43 }
 0x18b   :  { %v104_v48 = vpop.xlane.xlu1 %103 }
 0x18c   :  { %v105_v49 = vrot.slane %v104_v48, 4 }
 0x18e   :  { %v106_v50 = vadd.f32 %v105_v49, %v104_v48 }
 0x190   :  { %v107_v52 = vrot.slane %v106_v50, 2 }
 0x192   :  { %v108_v53 = vadd.f32 %v107_v52, %v106_v50 }
 0x194   :  { %v109_v55 = vrot.slane %v108_v53, 1 }
 0x196   :  { %v110_v56 = vadd.f32 %v109_v55, %v108_v53 }
 0x198   :  { %201 = vpush %v110_v56 }
 0x199   :  { %203 = vpush %v124_v57 }
 0x1c9   :  { %s202_s0 = spop %201 }
 0x1ca   :  { %v112_v58 = vstv %s202_s0  ;;  %s204_s1 = spop %203 }
 0x1cb   :  { %v114_v59 = vmul.f32 0.125, %v112_v58  ;;  %v126_v60 = vstv %s204_s1 }
 0x1cc   :  { %v127_v61 = vmul.f32 0.125, %v126_v60 }
 0x1cd   :  { %v115_v62 = vsub.f32 %v99_v42, %v114_v59 }
 0x1ce   :  { %v128_v63 = vsub.f32 %v317_v5, %v127_v61 }
 0x1cf   :  { %v129_v0 = vmul.f32 %v115_v62, %v115_v62 }
 0x1d0   :  { %v148_v1 = vmul.f32 %v128_v63, %v128_v63  ;;  %v167_v3 = vmul.f32 %v128_v63, %v115_v62 }
 0x1d1   :  { %v130_v2 = vsel %vm101_vm0, %v129_v0, 0.0 }
 0x1d2   :  { %131 = vadd.xlane.f32.xlu1 %v130_v2  ;;  %v149_v4 = vsel %vm101_vm0, %v148_v1, 0.0  ;;  %v168_v6 = vsel %vm101_vm0, %v167_v3, 0.0 }
 0x1d3   :  { %150 = vadd.xlane.f32.xlu0 %v149_v4 }
 0x1d6   :  { %169 = vadd.xlane.f32.xlu1 %v168_v6 }
 0x25f   :  { %v132_v7 = vpop.xlane.xlu1 %131 }
 0x260   :  { %v133_v8 = vrot.slane %v132_v7, 4  ;;  %v151_v9 = vpop.xlane.xlu0 %150 }
 0x261   :  { %v152_v10 = vrot.slane %v151_v9, 4 }
 0x262   :  { %v134_v11 = vadd.f32 %v133_v8, %v132_v7 }
 0x263   :  { %v153_v12 = vadd.f32 %v152_v10, %v151_v9  ;;  %v170_v13 = vpop.xlane.xlu1 %169 }
 0x264   :  { %v135_v5 = vrot.slane %v134_v11, 2  ;;  %v171_v14 = vrot.slane %v170_v13, 4 }
 0x265   :  { %v154_v15 = vrot.slane %v153_v12, 2 }
 0x266   :  { %v172_v16 = vadd.f32 %v171_v14, %v170_v13  ;;  %v136_v17 = vadd.f32 %v135_v5, %v134_v11 }
 0x267   :  { %v155_v18 = vadd.f32 %v154_v15, %v153_v12 }
 0x268   :  { %v173_v19 = vrot.slane %v172_v16, 2  ;;  %v137_v20 = vrot.slane %v136_v17, 1 }
 0x269   :  { %v156_v21 = vrot.slane %v155_v18, 1 }
 0x26a   :  { %v174_v22 = vadd.f32 %v173_v19, %v172_v16  ;;  %v138_v23 = vadd.f32 %v137_v20, %v136_v17 }
 0x26b   :  { %v157_v24 = vadd.f32 %v156_v21, %v155_v18 }
 0x26c   :  { %205 = vpush %v138_v23  ;;  %v175_v25 = vrot.slane %v174_v22, 1 }
 0x26d   :  { %207 = vpush %v157_v24 }
 0x26e   :  { %v176_v26 = vadd.f32 %v175_v25, %v174_v22 }
 0x270   :  { %209 = vpush %v176_v26 }
 0x29d   :  { %s206_s2 = spop %205 }
 0x29e   :  { %v140_v27 = vstv %s206_s2  ;;  %s208_s28 = spop %207 }
 0x29f   :  { %223 = vrsqrt.f32 %v140_v27  ;;  %v159_v28 = vstv %s208_s28  ;;  %vm143_vm5 = vcmp.eq.f32.partialorder %v140_v27, inf  ;;  %v146_v32 = vand.u32 2147483648, %v140_v27 }
 0x2a0   :  { %225 = vrsqrt.f32 %v159_v28  ;;  %vm145_vm6 = vcmp.eq.f32.partialorder %v140_v27, 0.0  ;;  %vm162_vm7 = vcmp.eq.f32.partialorder %v159_v28, inf  ;;  %v165_v36 = vand.u32 2147483648, %v159_v28 }
 0x2a1   :  { %vm164_vm8 = vcmp.eq.f32.partialorder %v159_v28, 0.0  ;;  %s210_s29 = spop %209 }
 0x2a2   :  { %v178_v42 = vstv %s210_s29 }
 0x2a9   :  { %v224_v29 = vpop.eup %223 }
 0x2aa   :  { %v142_v30 = vmul.f32 %v224_v29, %v140_v27  ;;  %v226_v31 = vpop.eup %225 }
 0x2ab   :  { %v161_v34 = vmul.f32 %v226_v31, %v159_v28 }
 0x2ac   :  { %v144_v33 = vsel %vm143_vm5, %v140_v27, %v142_v30 }
 0x2ad   :  { %v147_v35 = vsel %vm145_vm6, %v146_v32, %v144_v33  ;;  %v163_v37 = vsel %vm162_vm7, %v159_v28, %v161_v34 }
 0x2ae   :  { %v166_v38 = vsel %vm164_vm8, %v165_v36, %v163_v37 }
 0x2af   :  { %v179_v39 = vmul.f32 %v166_v38, %v147_v35 }
 0x2b1   :  { %v180_v40 = vmax.f32 %v179_v39, 1e-08 }
 0x2b3   :  { %227 = vrcp.f32 %v180_v40 }
 0x2bd   :  { %v228_v41 = vpop.eup %227 }
 0x2be   :  { %v182_v43 = vmul.f32 %v228_v41, %v178_v42 }
 0x2c0   :  { %v183_v44 = vsub.f32 0.0, %v182_v43 }
 0x2c2   :  { %185 = vst.msk [vmem:[#allocation8] sm:$0x1] %vm184_vm9, %v183_v44 }
 0x2c3   :  { %262 = shalt.err (!%p259_p12)
}
 0x2c4   :  { %s263_s9 = scalar_lea.hbm %s341_s3, 16 }
 0x2c5   :  { %p264_p13 = scmp.ne.s32.totalorder %s341_s3, %s263_s9  ;;  %p267_p0 = scmp.lt.u32.totalorder %s263_s9, %s341_s3 }
 0x2c7   :  { %p269_p1 = pnand %p267_p0, %p264_p13 }
 0x2c9   :  { %272 = shalt.err (!%p269_p1)
}
 0x2ca   :  { %195 = dma.vmem_to_hbm [thread:$0]  %s193_s4, 16, %s341_s3, [#allocation7]  }
 0x2cb   :  { %275 = dma.done.wait [#allocation7], 16  }
 0x2cc   :  { %276 = vsyncadd [#allocation7], 4294967280 }
 0x2cd   :  { %199 = vsyncpa [#allocation6], 1 }
 0x2ce   :  { %200 = vsyncpa [#allocation7], 1 }

</bundles_post_ra>
